<compile_context>
chip_gen: v5e
topology: v5e:2x2
jax: 0.10.0
libtpu: 0.0.40
codegen_flags: <defaults>
</compile_context>

<pallas_src>
import functools
import math

import jax
import jax.numpy as jnp
from jax.experimental import pallas as pl
from jax.experimental.pallas import tpu as pltpu

EPS = 1e-5


def _round_up(x, m):
    return ((x + m - 1) // m) * m


@functools.lru_cache(maxsize=1)
def _device_config():
    """Returns (vmem_capacity_bytes, is_v7x), queried once with safe fallbacks."""
    kind = ""
    try:
        kind = jax.devices()[0].device_kind.lower()
    except Exception:
        pass
    is_v7 = "v7" in kind
    vmem = 64 * 1024 * 1024 if is_v7 else 128 * 1024 * 1024
    try:
        vmem = int(pltpu.get_tpu_info().vmem_capacity_bytes)
    except Exception:
        pass
    return vmem, is_v7


def _pick_tile_rows(rows, h, itemsize, vmem_capacity, multi_core):
    """Largest row tile whose working set (pipeline buffers + f32 temps) fits
    a generation-aware VMEM budget."""
    # ~40 MiB working-set budget on v7x (64 MiB physical VMEM), ~64 MiB else.
    budget = 40 * 1024 * 1024 if vmem_capacity <= 64 * 1024 * 1024 else 64 * 1024 * 1024
    # Per row: double-buffered (input + output) tiles + ~3 f32-wide temporaries
    # (f32 copy of x, centered values, normalized-output expression).
    per_row = 2 * 2 * h * itemsize + 3 * 4 * h
    t = budget // per_row
    t = max(16, min(1024, int(t)))
    t = (t // 16) * 16                       # sublane packing (bf16 needs 16)
    # Never (much) larger than the row count.
    t = min(t, max(16, _round_up(rows, 16)))
    if multi_core and rows >= 32:
        # v7x only: guarantee >= 2 balanced grid steps so both TensorCores work.
        half = _round_up((rows + 1) // 2, 16)
        t = min(t, half)
    return max(16, t)


def _layernorm_kernel(x_ref, w_ref, b_ref, o_ref):
    # x_ref: (TILE_ROWS, H); w_ref/b_ref: (1, H) f32, resident; o_ref like x_ref.
    x = x_ref[...].astype(jnp.float32)
    inv_h = jnp.float32(1.0 / x.shape[-1])
    # Two-pass statistics: better conditioned than E[x^2]-mean^2, same op count.
    mean = jnp.sum(x, axis=-1, keepdims=True) * inv_h
    xc = x - mean
    var = jnp.sum(xc * xc, axis=-1, keepdims=True) * inv_h
    inv = jax.lax.rsqrt(var + jnp.float32(EPS))
    # TODO(synk): if a v7x bundle profile shows VALU saturated after the core
    # split, move the two lane reductions onto the idle MXU via jnp.dot(x, ones).
    o_ref[...] = (xc * inv * w_ref[...] + b_ref[...]).astype(o_ref.dtype)


@jax.jit
def gpt2_layer_norm(x, weight, bias=None):
    """LayerNorm over the last axis of x with learnable weight/(optional) bias."""
    orig_shape = x.shape
    H = orig_shape[-1]
    rows = int(math.prod(orig_shape[:-1])) if len(orig_shape) > 1 else 1

    if bias is None:
        bias = jnp.zeros((H,), dtype=weight.dtype)

    vmem_capacity, is_v7 = _device_config()
    itemsize = jnp.dtype(x.dtype).itemsize
    tile_rows = _pick_tile_rows(rows, H, itemsize, vmem_capacity, is_v7)
    grid = pl.cdiv(rows, tile_rows)

    x2 = x.reshape(rows, H)
    # Pre-cast params to f32 once in the wrapper (2*H*4 bytes of HBM traffic,
    # negligible) so the kernel never re-casts the resident (1, H) blocks.
    w2 = weight.reshape(1, H).astype(jnp.float32)
    b2 = bias.reshape(1, H).astype(jnp.float32)

    # VMEM accounting: double-buffered in+out tiles + in-kernel f32 temps
    # + resident params + small headroom; capped below physical VMEM.
    tile_bytes = tile_rows * H * itemsize
    temps_bytes = 3 * tile_rows * H * 4
    vmem_limit = 2 * 2 * tile_bytes + temps_bytes + 4 * H * 4 + 2 * 1024 * 1024
    vmem_limit = int(min(vmem_limit, vmem_capacity - 16 * 1024 * 1024))
    vmem_limit = max(vmem_limit, 16 * 1024 * 1024)

    # Row axis is embarrassingly parallel; on v7x shard it across the two
    # TensorCores (plain "parallel" is measured to change nothing there).
    row_semantics = pltpu.CORE_PARALLEL if (is_v7 and grid >= 2) else "parallel"

    out = pl.pallas_call(
        _layernorm_kernel,
        out_shape=jax.ShapeDtypeStruct((rows, H), x.dtype),
        grid_spec=pltpu.PrefetchScalarGridSpec(
            num_scalar_prefetch=0,
            grid=(grid,),
            in_specs=[
                pl.BlockSpec((tile_rows, H), lambda i: (i, 0)),
                pl.BlockSpec((1, H), lambda i: (0, 0)),   # weight: f32, resident
                pl.BlockSpec((1, H), lambda i: (0, 0)),   # bias:   f32, resident
            ],
            out_specs=pl.BlockSpec((tile_rows, H), lambda i: (i, 0)),
        ),
        compiler_params=pltpu.CompilerParams(
            dimension_semantics=(row_semantics,),
            vmem_limit_bytes=vmem_limit,
        ),
    )(x2, w2, b2)

    return out.reshape(orig_shape)


if __name__ == "__main__":
    # Small shapes consistent with the module: (batch, seq, hidden).
    B, S, H = 2, 8, 32
    key = jax.random.PRNGKey(0)
    x = jax.random.normal(key, (B, S, H), dtype=jnp.float32)

    # Parameters as in Gpt2LayerNorm.__init__(ndim=H, bias=True): ones / zeros.
    weight = jnp.ones((H,), dtype=jnp.float32)
    bias = jnp.zeros((H,), dtype=jnp.float32)

    out = gpt2_layer_norm(x, weight, bias)
    out = jax.block_until_ready(out)

    # Reference check against plain-JAX layer norm.
    mean = jnp.mean(x, axis=-1, keepdims=True)
    var = jnp.mean((x - mean) ** 2, axis=-1, keepdims=True)
    ref = (x - mean) / jnp.sqrt(var + EPS) * weight + bias
    assert jnp.allclose(out, ref, atol=1e-5, rtol=1e-5), "mismatch vs reference"

    # Non-tile-aligned rows (111) and non-128-multiple hidden (GPT-2 XL H=1600):
    # exercises the ragged boundary block and masked-store paths (no padding).
    x2 = jax.random.normal(jax.random.PRNGKey(1), (3, 37, 1600), dtype=jnp.float32)
    w2 = jax.random.normal(jax.random.PRNGKey(2), (1600,), dtype=jnp.float32)
    b2 = jax.random.normal(jax.random.PRNGKey(3), (1600,), dtype=jnp.float32)
    out2 = jax.block_until_ready(gpt2_layer_norm(x2, w2, b2))
    m2 = jnp.mean(x2, axis=-1, keepdims=True)
    v2 = jnp.mean((x2 - m2) ** 2, axis=-1, keepdims=True)
    ref2 = (x2 - m2) / jnp.sqrt(v2 + EPS) * w2 + b2
    assert jnp.allclose(out2, ref2, atol=2e-4, rtol=2e-4), "mismatch vs reference (large)"

    # Mean-shifted input to exercise the two-pass variance path.
    x3 = 100.0 + jax.random.normal(jax.random.PRNGKey(4), (4, 16, 256), dtype=jnp.float32)
    out3 = jax.block_until_ready(gpt2_layer_norm(x3, jnp.ones((256,)), jnp.zeros((256,))))
    m3 = jnp.mean(x3, axis=-1, keepdims=True)
    v3 = jnp.mean((x3 - m3) ** 2, axis=-1, keepdims=True)
    ref3 = (x3 - m3) / jnp.sqrt(v3 + EPS)
    assert jnp.allclose(out3, ref3, atol=1e-3, rtol=1e-3), "mismatch vs reference (shifted)"

    print("KERNEL_OK")
</pallas_src>

<mosaic_0001>
module attributes {stable_mosaic.version = 11 : i64} {
  func.func @_layernorm_kernel(%arg0: i32, %arg1: memref<16x32xf32, #tpu.memory_space<vmem>>, %arg2: memref<1x32xf32, #tpu.memory_space<vmem>>, %arg3: memref<1x32xf32, #tpu.memory_space<vmem>>, %arg4: memref<16x32xf32, #tpu.memory_space<vmem>>) attributes {dimension_semantics = [#tpu.dimension_semantics<parallel>], iteration_bounds = array<i64: 1>, scalar_prefetch = 0 : i64, scratch_operands = 0 : i64, tpu.core_type = #tpu.core_type<tc>, window_params = [{transform_indices = @transform_0, window_bounds = array<i64: 16, 32>}, {pipeline_mode = #tpu.pipeline_mode<synchronous>, transform_indices = @transform_1, window_bounds = array<i64: 1, 32>}, {pipeline_mode = #tpu.pipeline_mode<synchronous>, transform_indices = @transform_2, window_bounds = array<i64: 1, 32>}, {transform_indices = @transform_3, window_bounds = array<i64: 16, 32>}]} {
    %c0 = arith.constant 0 : index
    %c0_0 = arith.constant 0 : index
    %0 = vector.load %arg1[%c0, %c0_0] : memref<16x32xf32, #tpu.memory_space<vmem>>, vector<16x32xf32>
    %cst = arith.constant dense<0.000000e+00> : vector<16xf32>
    %1 = vector.multi_reduction <add>, %0, %cst [1] : vector<16x32xf32> to vector<16xf32>
    %2 = vector.shape_cast %1 : vector<16xf32> to vector<16x1xf32>
    %cst_1 = arith.constant 3.125000e-02 : f32
    %3 = vector.broadcast %cst_1 : f32 to vector<16x1xf32>
    %4 = arith.mulf %2, %3 : vector<16x1xf32>
    %5 = vector.broadcast %4 : vector<16x1xf32> to vector<16x32xf32>
    %6 = arith.subf %0, %5 : vector<16x32xf32>
    %7 = arith.mulf %6, %6 : vector<16x32xf32>
    %cst_2 = arith.constant dense<0.000000e+00> : vector<16xf32>
    %8 = vector.multi_reduction <add>, %7, %cst_2 [1] : vector<16x32xf32> to vector<16xf32>
    %9 = vector.shape_cast %8 : vector<16xf32> to vector<16x1xf32>
    %cst_3 = arith.constant 3.125000e-02 : f32
    %10 = vector.broadcast %cst_3 : f32 to vector<16x1xf32>
    %11 = arith.mulf %9, %10 : vector<16x1xf32>
    %cst_4 = arith.constant 9.99999974E-6 : f32
    %12 = vector.broadcast %cst_4 : f32 to vector<16x1xf32>
    %13 = arith.addf %11, %12 : vector<16x1xf32>
    %14 = math.rsqrt %13 : vector<16x1xf32>
    %15 = vector.broadcast %14 : vector<16x1xf32> to vector<16x32xf32>
    %16 = arith.mulf %6, %15 : vector<16x32xf32>
    %c0_5 = arith.constant 0 : index
    %c0_6 = arith.constant 0 : index
    %17 = vector.load %arg2[%c0_5, %c0_6] : memref<1x32xf32, #tpu.memory_space<vmem>>, vector<1x32xf32>
    %18 = vector.broadcast %17 : vector<1x32xf32> to vector<16x32xf32>
    %19 = arith.mulf %16, %18 : vector<16x32xf32>
    %c0_7 = arith.constant 0 : index
    %c0_8 = arith.constant 0 : index
    %20 = vector.load %arg3[%c0_7, %c0_8] : memref<1x32xf32, #tpu.memory_space<vmem>>, vector<1x32xf32>
    %21 = vector.broadcast %20 : vector<1x32xf32> to vector<16x32xf32>
    %22 = arith.addf %19, %21 : vector<16x32xf32>
    %c0_9 = arith.constant 0 : index
    %c0_10 = arith.constant 0 : index
    %23 = vector.load %arg4[%c0_9, %c0_10] : memref<16x32xf32, #tpu.memory_space<vmem>>, vector<16x32xf32>
    tpu.vector_store %arg4[%c0_9, %c0_10], %22 {strides = array<i32>} : memref<16x32xf32, #tpu.memory_space<vmem>>, vector<16x32xf32>,
    return
  }
  func.func @transform_0(%arg0: i32) -> (i32, i32) {
    %c0_i32 = arith.constant 0 : i32
    %c0_i32_0 = arith.constant 0 : i32
    return %arg0, %c0_i32 : i32, i32
  }
  func.func @transform_1(%arg0: i32) -> (i32, i32) {
    %c0_i32 = arith.constant 0 : i32
    %c0_i32_0 = arith.constant 0 : i32
    %c0_i32_1 = arith.constant 0 : i32
    return %c0_i32, %c0_i32_0 : i32, i32
  }
  func.func @transform_2(%arg0: i32) -> (i32, i32) {
    %c0_i32 = arith.constant 0 : i32
    %c0_i32_0 = arith.constant 0 : i32
    %c0_i32_1 = arith.constant 0 : i32
    return %c0_i32, %c0_i32_0 : i32, i32
  }
  func.func @transform_3(%arg0: i32) -> (i32, i32) {
    %c0_i32 = arith.constant 0 : i32
    %c0_i32_0 = arith.constant 0 : i32
    return %arg0, %c0_i32 : i32, i32
  }
}

</mosaic_0001>

<bundles_post_ra>
// kernel: gpt2_layer_norm.1
= control target key start
LH: loop header
LB: loop body
LE: loop exit
PB: predicated region body
PF: predicated region fallthrough
CT: control target
= control target key end

     0   :  { %8 = vsyncpa [#allocation3], 0  ;;  %s221_s0 = inlined_call_operand.hbm [shape: f32[16,32], index: 0, kind: input, shape index: {}]   ;;  %s222_s1 = inlined_call_operand.vmem [shape: f32[1,32], index: 1, kind: input, shape index: {}]   ;;  %s223_s2 = inlined_call_operand.vmem [shape: f32[1,32], index: 2, kind: input, shape index: {}]   ;;  %s224_s3 = inlined_call_operand.hbm [shape: f32[16,32], index: 3, kind: output, shape index: {}]  }
   0x1   :  { %9 = vsyncpa [#allocation4], 0  ;;  %s14_s14 = sshll.u32 %s221_s0, 4  ;;  %s173_s15 = smov [#allocation2]   ;;  %s15_s14 = int_to_ptr.hbm [resolvable:$true] %s14_s14 }
   0x2   :  { %s16_s16 = sshll.u32 %s173_s15, 4  ;;  %s174_s17 = smov 128   ;;  %s17_s16 = int_to_ptr.vmem [resolvable:$true] %s16_s16 }
   0x3   :  { %s175_s18 = smov 8  }
   0x4   :  { %22 = dma.hbm_to_vmem [thread:$0]  %s15_s14, 256, %s17_s16, [#allocation3], %s174_s17, %s174_s17, %s175_s18  }
   0x5   :  { %169 = dma.done.wait [#allocation3], 256  }
   0x6   :  { %170 = vsyncadd [#allocation3], 4294967040  ;;  %vm33_vm0 = vcmask 261120   ;;  %v31_v0 = vld [vmem:[#allocation2] sm:$0xff]  ;;  %v32_v2 = vld [vmem:[#allocation2 + $0x8] sm:$0xff]  ;;  %s98_s25 = sshll.u32 %s224_s3, 4  ;;  %s99_s25 = int_to_ptr.hbm [resolvable:$true] %s98_s25 }
   0x7   :  { %v34_v1 = vsel %vm33_vm0, %v31_v0, 0.0  ;;  %v37_v3 = vsel %vm33_vm0, %v32_v2, 0.0  ;;  %v115_v28 = vld [vmem:[%s222_s1] ss:$0 sm:$0xff]  ;;  %s176_s1 = smov [#allocation5]  }
   0x8   :  { %35 = vadd.xlane.f32.xlu0 %v34_v1  ;;  %v116_v32 = vld [vmem:[%s223_s2] ss:$0 sm:$0xff]  ;;  %s96_s22 = sshll.u32 %s176_s1, 4  ;;  %s97_s22 = int_to_ptr.vmem [resolvable:$true] %s96_s22 }
  0x10   :  { %38 = vadd.xlane.f32.xlu0 %v37_v3 }
  0x7b   :  { %v36_v4 = vpop.xlane.xlu0 %35 }
  0x7c   :  { %v40_v5 = vmul.f32 0.03125, %v36_v4 }
  0x7e   :  { %v42_v6 = vsub.f32 %v31_v0, %v40_v5 }
  0x80   :  { %v44_v7 = vmul.f32 %v42_v6, %v42_v6 }
  0x82   :  { %v46_v8 = vsel %vm33_vm0, %v44_v7, 0.0 }
  0x83   :  { %47 = vadd.xlane.f32.xlu1 %v46_v8  ;;  %v39_v9 = vpop.xlane.xlu0 %38 }
  0x84   :  { %v41_v10 = vmul.f32 0.03125, %v39_v9 }
  0x86   :  { %v43_v11 = vsub.f32 %v32_v2, %v41_v10 }
  0x88   :  { %v45_v12 = vmul.f32 %v43_v11, %v43_v11 }
  0x8a   :  { %v49_v13 = vsel %vm33_vm0, %v45_v12, 0.0 }
  0x8b   :  { %50 = vadd.xlane.f32.xlu1 %v49_v13 }
  0xf6   :  { %v48_v14 = vpop.xlane.xlu1 %47 }
  0xf7   :  { %v52_v15 = vmul.f32 0.03125, %v48_v14 }
  0xf9   :  { %v54_v16 = vadd.f32 1e-05, %v52_v15 }
  0xfb   :  { %117 = vrsqrt.f32 %v54_v16  ;;  %vm62_vm2 = vweird.f32 %v54_v16 }
  0xfe   :  { %v51_v17 = vpop.xlane.xlu1 %50 }
  0xff   :  { %v53_v18 = vmul.f32 0.03125, %v51_v17 }
 0x101   :  { %v118_v19 = vpop.eup %117  ;;  %v55_v20 = vadd.f32 1e-05, %v53_v18 }
 0x102   :  { %v57_v21 = vmul.f32 %v118_v19, %v54_v16  ;;  %vm63_vm1 = vweird.f32 %v118_v19 }
 0x103   :  { %119 = vrsqrt.f32 %v55_v20  ;;  %vm64_vm3 = vmor %vm62_vm2, %vm63_vm1  ;;  %vm72_vm5 = vweird.f32 %v55_v20 }
 0x104   :  { %v58_v22 = vmul.f32 %v118_v19, %v57_v21 }
 0x106   :  { %v59_v23 = vmul.f32 0.5, %v58_v22 }
 0x108   :  { %v60_v24 = vsub.f32 1.5, %v59_v23 }
 0x109   :  { %v120_v25 = vpop.eup %119 }
 0x10a   :  { %v61_v26 = vmul.f32 %v118_v19, %v60_v24  ;;  %v67_v27 = vmul.f32 %v120_v25, %v55_v20  ;;  %vm73_vm4 = vweird.f32 %v120_v25 }
 0x10b   :  { %vm74_vm6 = vmor %vm72_vm5, %vm73_vm4 }
 0x10c   :  { %v65_v29 = vsel %vm64_vm3, %v118_v19, %v61_v26  ;;  %v68_v30 = vmul.f32 %v120_v25, %v67_v27 }
 0x10d   :  { %v76_v31 = vmul.f32 %v65_v29, %v42_v6 }
 0x10e   :  { %v69_v33 = vmul.f32 0.5, %v68_v30 }
 0x10f   :  { %v82_v34 = vmul.f32 %v115_v28, %v76_v31 }
 0x110   :  { %v70_v35 = vsub.f32 1.5, %v69_v33 }
 0x111   :  { %v88_v36 = vadd.f32 %v116_v32, %v82_v34 }
 0x112   :  { %v71_v37 = vmul.f32 %v120_v25, %v70_v35 }
 0x113   :  { %90 = vst.msk [vmem:[#allocation5] sm:$0xff] %vm33_vm0, %v88_v36 }
 0x114   :  { %v75_v38 = vsel %vm74_vm6, %v120_v25, %v71_v37 }
 0x115   :  { %v77_v39 = vmul.f32 %v75_v38, %v43_v11 }
 0x117   :  { %v83_v40 = vmul.f32 %v115_v28, %v77_v39 }
 0x119   :  { %v89_v41 = vadd.f32 %v116_v32, %v83_v40 }
 0x11b   :  { %91 = vst.msk [vmem:[#allocation5 + $0x8] sm:$0xff] %vm33_vm0, %v89_v41 }
 0x11c   :  { %104 = dma.vmem_to_hbm [thread:$0]  %s97_s22, 256, %s99_s25, [#allocation4], %s174_s17, %s174_s17, %s175_s18  }
 0x11d   :  { %171 = dma.done.wait [#allocation4], 256  }
 0x11e   :  { %172 = vsyncadd [#allocation4], 4294967040 }
 0x11f   :  { %109 = vsyncpa [#allocation3], 1 }
 0x120   :  { %110 = vsyncpa [#allocation4], 1 }

</bundles_post_ra>
